<compile_context>
chip_gen: v7x
topology: tpu7x:2x2x1
jax: 0.10.0
libtpu: 0.0.40
codegen_flags: <defaults>
</compile_context>

<pallas_src>
import math

import jax
import jax.numpy as jnp
import numpy as np
from jax.experimental import pallas as pl
from jax.experimental.pallas import tpu as pltpu

_NEG_FLOOR = -1e30          # finite floor for the online-softmax running max
_VMEM_LIMIT = 48 * 1024 * 1024   # explicit scoped-VMEM budget (fits v7x's 64 MiB)


def _round_up(x, m):
    return ((x + m - 1) // m) * m


# ---------------- main kernel: scores + online log-sum-exp over (batch, vocab) tiles
def copy_mechanism_kernel(logits_ref, enc_ref, mask_ref, wg_ref, bg_ref,
                          wc_ref, bc_ref,
                          gen_ref, copy_ref, lse_ref,
                          copy_sc, m_run, d_run):
    j = pl.program_id(1)
    nj = pl.num_programs(1)

    x = logits_ref[...]                                           # (TB, D) f32

    # generation_scores tile: bf16 MXU operands, f32 accumulation, f32 bias add.
    gen_tile = jnp.dot(x.astype(jnp.bfloat16), wg_ref[...],
                       preferred_element_type=jnp.float32) + bg_ref[...]   # (TB, TN)
    gen_ref[...] = gen_tile                                       # raw scores, lane-dense

    # Copy path + accumulator init: hoisted to j == 0 (runs once per batch tile).
    @pl.when(j == 0)
    def _init():
        TB, S_p, E = enc_ref.shape
        D = x.shape[1]
        # Keep enc f32 for the (TB,S_p,E)->(TB*S_p,E) reshape (sublane-exact for f32),
        # cast to bf16 only as the MXU operand; tanh stays f32 (v5e has no bf16 EUP).
        enc2d = enc_ref[...].reshape(TB * S_p, E).astype(jnp.bfloat16)
        proj = jnp.tanh(
            jnp.dot(enc2d, wc_ref[...], preferred_element_type=jnp.float32)
            + bc_ref[...])                                        # (TB*S_p, D) f32
        proj = proj.reshape(TB, S_p, D)
        # copy_scores = bmm(encoder_out, logits) as broadcast-multiply + lane reduce:
        # runs on VPU/XLU slots that are idle while the MXU streams the gen GEMM.
        copy = jnp.sum(proj * x[:, None, :], axis=-1)             # (TB, S_p) f32
        copy = jnp.where(mask_ref[...] != 0, -jnp.inf, copy)      # masked_fill_(-inf)
        copy_sc[...] = copy
        # Online-softmax init from the copy block; finite floor avoids NaN when an
        # entire copy row is masked.
        m0 = jnp.maximum(jnp.max(copy, axis=-1, keepdims=True), _NEG_FLOOR)
        m_run[...] = m0
        d_run[...] = jnp.sum(jnp.exp(copy - m0), axis=-1, keepdims=True)

    # Online log-sum-exp update with this generation tile.
    m_old = m_run[...]
    m_new = jnp.maximum(m_old, jnp.max(gen_tile, axis=-1, keepdims=True))
    d_run[...] = (d_run[...] * jnp.exp(m_old - m_new)
                  + jnp.sum(jnp.exp(gen_tile - m_new), axis=-1, keepdims=True))
    m_run[...] = m_new

    @pl.when(j == nj - 1)
    def _finalize():
        lse = m_run[...] + jnp.log(d_run[...])
        lse_ref[...] = lse
        copy_ref[...] = copy_sc[...] - lse                        # copy log-probs


# ---------------- epilogue: normalize generation tiles once lse is known ------------
def normalize_gen_kernel(gen_raw_ref, lse_ref, out_ref):
    out_ref[...] = gen_raw_ref[...] - lse_ref[...]


def copy_mechanism(logits, enc_out, mask, w_gen, b_gen, w_copy, b_copy, *,
                   tn_target=512):
    B, D = logits.shape
    _, S, E = enc_out.shape
    V = w_gen.shape[1]
    f32 = jnp.float32

    TB = 8                                    # f32 sublane count: batch tile
    B_p = _round_up(max(B, TB), TB)
    S_p = _round_up(S, 8)
    TN = min(tn_target, _round_up(V, 128))    # lane-multiple vocab tile (128..512)
    Vp = _round_up(V, TN)
    n_b, n_v = B_p // TB, Vp // TN

    # Pad batch / source / vocab axes.  Weights pre-cast to bf16 (half the streamed
    # DMA bytes); padded vocab columns get zero weight and a -1e30 bias so they
    # contribute exp(-1e30 - m) == 0 to the softmax and are sliced away below.
    logits_p = jnp.zeros((B_p, D), f32).at[:B].set(logits.astype(f32))
    enc_p = jnp.zeros((B_p, S_p, E), f32).at[:B, :S].set(enc_out.astype(f32))
    mask_p = jnp.ones((B_p, S_p), jnp.int32).at[:B, :S].set(mask.astype(jnp.int32))
    wg_p = jnp.zeros((D, Vp), jnp.bfloat16).at[:, :V].set(w_gen.astype(jnp.bfloat16))
    bg_p = jnp.full((1, Vp), _NEG_FLOOR, f32).at[:, :V].set(
        b_gen.reshape(1, V).astype(f32))
    wc = w_copy.astype(jnp.bfloat16)
    bc = b_copy.reshape(1, D).astype(f32)

    flops = (2 * B_p * D * Vp + 2 * B_p * S_p * E * D + 2 * B_p * S_p * D)
    trans = B_p * S_p * D + B_p * (Vp + S_p) + B_p
    bytes_accessed = (4 * (B_p * D + B_p * S_p * E + B_p * S_p)
                      + 2 * (D * Vp + E * D) + 4 * (Vp + D)
                      + 4 * (B_p * Vp + B_p * S_p + B_p))

    grid = (n_b, n_v)
    gen_raw, copy_lp, lse = pl.pallas_call(
        copy_mechanism_kernel,
        out_shape=(
            jax.ShapeDtypeStruct((B_p, Vp), f32),   # raw generation scores
            jax.ShapeDtypeStruct((B_p, S_p), f32),  # copy log-probs (normalized)
            jax.ShapeDtypeStruct((B_p, 1), f32),    # per-row log-sum-exp
        ),
        grid_spec=pltpu.PrefetchScalarGridSpec(
            num_scalar_prefetch=0,
            grid=grid,
            in_specs=[
                pl.BlockSpec((TB, D), lambda b, j: (b, 0)),        # logits
                pl.BlockSpec((TB, S_p, E), lambda b, j: (b, 0, 0)),  # encoder outputs
                pl.BlockSpec((TB, S_p), lambda b, j: (b, 0)),      # mask
                pl.BlockSpec((D, TN), lambda b, j: (0, j)),        # w_gen tile (bf16)
                pl.BlockSpec((1, TN), lambda b, j: (0, j)),        # b_gen tile
                pl.BlockSpec((E, D), lambda b, j: (0, 0)),         # w_copy (bf16)
                pl.BlockSpec((1, D), lambda b, j: (0, 0)),         # b_copy
            ],
            out_specs=[
                pl.BlockSpec((TB, TN), lambda b, j: (b, j)),       # gen scores (raw)
                pl.BlockSpec((TB, S_p), lambda b, j: (b, 0)),      # copy log-probs
                pl.BlockSpec((TB, 1), lambda b, j: (b, 0)),        # lse
            ],
            scratch_shapes=[
                pltpu.VMEM((TB, S_p), f32),   # copy-score scratch
                pltpu.VMEM((TB, 1), f32),     # running max
                pltpu.VMEM((TB, 1), f32),     # running denom
            ],
        ),
        compiler_params=pltpu.CompilerParams(
            dimension_semantics=("parallel", "arbitrary"),
            vmem_limit_bytes=_VMEM_LIMIT,
        ),
        cost_estimate=pl.CostEstimate(flops=flops, transcendentals=trans,
                                      bytes_accessed=bytes_accessed),
    )(logits_p, enc_p, mask_p, wg_p, bg_p, wc, bc)

    gen_lp = pl.pallas_call(
        normalize_gen_kernel,
        out_shape=jax.ShapeDtypeStruct((B_p, Vp), f32),
        grid_spec=pltpu.PrefetchScalarGridSpec(
            num_scalar_prefetch=0,
            grid=grid,
            in_specs=[pl.BlockSpec((TB, TN), lambda b, j: (b, j)),
                      pl.BlockSpec((TB, 1), lambda b, j: (b, 0))],
            out_specs=pl.BlockSpec((TB, TN), lambda b, j: (b, j)),
        ),
        compiler_params=pltpu.CompilerParams(
            dimension_semantics=("parallel", "parallel"),
            vmem_limit_bytes=_VMEM_LIMIT,
        ),
    )(gen_raw, lse)

    # Final unpadded concat to (B, V+S): V+S is not lane-aligned by construction, so
    # this slice+concat is left to XLA (the kernels keep their stores lane-dense).
    return jnp.concatenate([gen_lp[:B, :V], copy_lp[:B, :S]], axis=-1)


# ---------------- references ---------------------------------------------------------
def reference_f32(logits, enc_out, mask, w_gen, b_gen, w_copy, b_copy):
    gen = logits @ w_gen + b_gen
    proj = jnp.tanh(enc_out @ w_copy + b_copy)
    copy = jnp.einsum("bsd,bd->bs", proj, logits)
    copy = jnp.where(mask != 0, -jnp.inf, copy)
    return jax.nn.log_softmax(jnp.concatenate([gen, copy], axis=-1), axis=-1)


def reference_bf16_mxu(logits, enc_out, mask, w_gen, b_gen, w_copy, b_copy):
    # Mirrors the kernel's precision: bf16 MXU operands, f32 accumulation/elementwise.
    bf16 = jnp.bfloat16
    B, S, E = enc_out.shape
    gen = jnp.dot(logits.astype(bf16), w_gen.astype(bf16),
                  preferred_element_type=jnp.float32) + b_gen
    proj = jnp.tanh(
        jnp.dot(enc_out.reshape(B * S, E).astype(bf16), w_copy.astype(bf16),
                preferred_element_type=jnp.float32) + b_copy).reshape(B, S, -1)
    copy = jnp.sum(proj * logits[:, None, :], axis=-1)
    copy = jnp.where(mask != 0, -jnp.inf, copy)
    return jax.nn.log_softmax(jnp.concatenate([gen, copy], axis=-1), axis=-1)


if __name__ == "__main__":
    B, S = 2, 8
    D = 32          # de_logits_hz
    E = 32          # en_output_hz
    V = 64          # vocab_size_pred

    key = jax.random.PRNGKey(0)
    k_log, k_enc, k_wg, k_bg, k_wc, k_bc = jax.random.split(key, 6)

    logits = jax.random.normal(k_log, (B, D), dtype=jnp.float32)
    enc_out = jax.random.normal(k_enc, (B, S, E), dtype=jnp.float32)

    lim_g = 1.0 / math.sqrt(D)
    lim_c = 1.0 / math.sqrt(E)
    w_gen = jax.random.uniform(k_wg, (D, V), jnp.float32, -lim_g, lim_g)
    b_gen = jax.random.uniform(k_bg, (1, V), jnp.float32, -lim_g, lim_g)
    w_copy = jax.random.uniform(k_wc, (E, D), jnp.float32, -lim_c, lim_c)
    b_copy = jax.random.uniform(k_bc, (1, D), jnp.float32, -lim_c, lim_c)

    # mask[b, s] = 1 for padding positions (s >= length[b])
    lengths = jnp.array([5, 7], dtype=jnp.int32)
    mask = (jnp.arange(S)[None, :] >= lengths[:, None]).astype(jnp.int32)

    out = copy_mechanism(logits, enc_out, mask, w_gen, b_gen, w_copy, b_copy)
    out = jax.block_until_ready(out)

    # Tight check against a reference with the kernel's bf16-MXU precision.
    ref_mixed = reference_bf16_mxu(logits, enc_out, mask, w_gen, b_gen, w_copy, b_copy)
    np.testing.assert_allclose(np.asarray(out), np.asarray(ref_mixed),
                               rtol=1e-3, atol=1e-3)
    # Loose sanity check against the pure-f32 module semantics (bf16 GEMM inputs).
    ref_f32 = reference_f32(logits, enc_out, mask, w_gen, b_gen, w_copy, b_copy)
    np.testing.assert_allclose(np.asarray(out), np.asarray(ref_f32),
                               rtol=5e-2, atol=5e-2)
    print("KERNEL_OK")
</pallas_src>

<mosaic_0001>
module attributes {stable_mosaic.version = 11 : i64} {
  func.func @copy_mechanism_kernel(%arg0: i32, %arg1: i32, %arg2: memref<8x32xf32, #tpu.memory_space<vmem>>, %arg3: memref<8x8x32xf32, #tpu.memory_space<vmem>>, %arg4: memref<8x8xi32, #tpu.memory_space<vmem>>, %arg5: memref<32x128xbf16, #tpu.memory_space<vmem>>, %arg6: memref<1x128xf32, #tpu.memory_space<vmem>>, %arg7: memref<32x32xbf16, #tpu.memory_space<vmem>>, %arg8: memref<1x32xf32, #tpu.memory_space<vmem>>, %arg9: memref<8x128xf32, #tpu.memory_space<vmem>>, %arg10: memref<8x8xf32, #tpu.memory_space<vmem>>, %arg11: memref<8x1xf32, #tpu.memory_space<vmem>>, %arg12: memref<8x8xf32, #tpu.memory_space<vmem>>, %arg13: memref<8x1xf32, #tpu.memory_space<vmem>>, %arg14: memref<8x1xf32, #tpu.memory_space<vmem>>) attributes {dimension_semantics = [#tpu.dimension_semantics<parallel>, #tpu.dimension_semantics<arbitrary>], iteration_bounds = array<i64: 1, 1>, scalar_prefetch = 0 : i64, scratch_operands = 3 : i64, tpu.core_type = #tpu.core_type<tc>, window_params = [{transform_indices = @transform_0, window_bounds = array<i64: 8, 32>}, {transform_indices = @transform_1, window_bounds = array<i64: 8, 8, 32>}, {transform_indices = @transform_2, window_bounds = array<i64: 8, 8>}, {transform_indices = @transform_3, window_bounds = array<i64: 32, 128>}, {transform_indices = @transform_4, window_bounds = array<i64: 1, 128>}, {pipeline_mode = #tpu.pipeline_mode<synchronous>, transform_indices = @transform_5, window_bounds = array<i64: 32, 32>}, {pipeline_mode = #tpu.pipeline_mode<synchronous>, transform_indices = @transform_6, window_bounds = array<i64: 1, 32>}, {transform_indices = @transform_7, window_bounds = array<i64: 8, 128>}, {transform_indices = @transform_8, window_bounds = array<i64: 8, 8>}, {transform_indices = @transform_9, window_bounds = array<i64: 8, 1>}]} {
    %c0 = arith.constant 0 : index
    %c0_0 = arith.constant 0 : index
    %0 = vector.load %arg2[%c0, %c0_0] : memref<8x32xf32, #tpu.memory_space<vmem>>, vector<8x32xf32>
    %1 = arith.truncf %0 : vector<8x32xf32> to vector<8x32xbf16>
    %c0_1 = arith.constant 0 : index
    %c0_2 = arith.constant 0 : index
    %2 = vector.load %arg5[%c0_1, %c0_2] : memref<32x128xbf16, #tpu.memory_space<vmem>>, vector<32x128xbf16>
    %cst = arith.constant dense<0.000000e+00> : vector<8x128xf32>
    %3 = tpu.matmul %1, %2, %cst {dimension_numbers = #tpu.dot_dimension_numbers<[1], [0], [0], [1], [0, 0, 1, 1], [], []>} : vector<8x32xbf16>, vector<32x128xbf16>, vector<8x128xf32> -> vector<8x128xf32>
    %c0_3 = arith.constant 0 : index
    %c0_4 = arith.constant 0 : index
    %4 = vector.load %arg6[%c0_3, %c0_4] : memref<1x128xf32, #tpu.memory_space<vmem>>, vector<1x128xf32>
    %5 = vector.broadcast %4 : vector<1x128xf32> to vector<8x128xf32>
    %6 = arith.addf %3, %5 : vector<8x128xf32>
    %c0_5 = arith.constant 0 : index
    %c0_6 = arith.constant 0 : index
    %7 = vector.load %arg9[%c0_5, %c0_6] : memref<8x128xf32, #tpu.memory_space<vmem>>, vector<8x128xf32>
    tpu.vector_store %arg9[%c0_5, %c0_6], %6 {strides = array<i32>} : memref<8x128xf32, #tpu.memory_space<vmem>>, vector<8x128xf32>,
    %c0_i32 = arith.constant 0 : i32
    %8 = arith.cmpi eq, %arg1, %c0_i32 : i32
    %9 = arith.extui %8 : i1 to i32
    %c0_i32_7 = arith.constant 0 : i32
    %10 = arith.cmpi ne, %9, %c0_i32_7 : i32
    scf.if %10 {
      %c0_20 = arith.constant 0 : index
      %c0_21 = arith.constant 0 : index
      %c0_22 = arith.constant 0 : index
      %30 = vector.load %arg3[%c0_20, %c0_21, %c0_22] : memref<8x8x32xf32, #tpu.memory_space<vmem>>, vector<8x8x32xf32>
      %31 = vector.shape_cast %30 : vector<8x8x32xf32> to vector<64x32xf32>
      %32 = arith.truncf %31 : vector<64x32xf32> to vector<64x32xbf16>
      %c0_23 = arith.constant 0 : index
      %c0_24 = arith.constant 0 : index
      %33 = vector.load %arg7[%c0_23, %c0_24] : memref<32x32xbf16, #tpu.memory_space<vmem>>, vector<32x32xbf16>
      %cst_25 = arith.constant dense<0.000000e+00> : vector<64x32xf32>
      %34 = tpu.matmul %32, %33, %cst_25 {dimension_numbers = #tpu.dot_dimension_numbers<[1], [0], [0], [1], [0, 0, 1, 1], [], []>} : vector<64x32xbf16>, vector<32x32xbf16>, vector<64x32xf32> -> vector<64x32xf32>
      %c0_26 = arith.constant 0 : index
      %c0_27 = arith.constant 0 : index
      %35 = vector.load %arg8[%c0_26, %c0_27] : memref<1x32xf32, #tpu.memory_space<vmem>>, vector<1x32xf32>
      %36 = vector.broadcast %35 : vector<1x32xf32> to vector<64x32xf32>
      %37 = arith.addf %34, %36 : vector<64x32xf32>
      %38 = math.tanh %37 : vector<64x32xf32>
      %39 = vector.shape_cast %38 : vector<64x32xf32> to vector<8x8x32xf32>
      %40 = vector.shape_cast %0 : vector<8x32xf32> to vector<8x1x32xf32>
      %41 = vector.broadcast %40 : vector<8x1x32xf32> to vector<8x8x32xf32>
      %42 = arith.mulf %39, %41 : vector<8x8x32xf32>
      %cst_28 = arith.constant dense<0.000000e+00> : vector<8x8xf32>
      %43 = vector.multi_reduction <add>, %42, %cst_28 [2] : vector<8x8x32xf32> to vector<8x8xf32>
      %c0_29 = arith.constant 0 : index
      %c0_30 = arith.constant 0 : index
      %44 = vector.load %arg4[%c0_29, %c0_30] : memref<8x8xi32, #tpu.memory_space<vmem>>, vector<8x8xi32>
      %c0_i32_31 = arith.constant 0 : i32
      %45 = vector.broadcast %c0_i32_31 : i32 to vector<8x8xi32>
      %46 = arith.cmpi ne, %44, %45 : vector<8x8xi32>
      %cst_32 = arith.constant 0xFF800000 : f32
      %47 = vector.broadcast %cst_32 : f32 to vector<8x8xf32>
      %48 = arith.select %46, %47, %43 : vector<8x8xi1>, vector<8x8xf32>
      %c0_33 = arith.constant 0 : index
      %c0_34 = arith.constant 0 : index
      %49 = vector.load %arg12[%c0_33, %c0_34] : memref<8x8xf32, #tpu.memory_space<vmem>>, vector<8x8xf32>
      tpu.vector_store %arg12[%c0_33, %c0_34], %48 {strides = array<i32>} : memref<8x8xf32, #tpu.memory_space<vmem>>, vector<8x8xf32>,
      %cst_35 = arith.constant dense<0xFF800000> : vector<8xf32>
      %50 = vector.multi_reduction <maximumf>, %48, %cst_35 [1] : vector<8x8xf32> to vector<8xf32>
      %51 = vector.shape_cast %50 : vector<8xf32> to vector<8x1xf32>
      %cst_36 = arith.constant -1.000000e+30 : f32
      %52 = vector.broadcast %cst_36 : f32 to vector<8x1xf32>
      %53 = arith.maximumf %51, %52 : vector<8x1xf32>
      %c0_37 = arith.constant 0 : index
      %c0_38 = arith.constant 0 : index
      %54 = vector.load %arg13[%c0_37, %c0_38] : memref<8x1xf32, #tpu.memory_space<vmem>>, vector<8x1xf32>
      tpu.vector_store %arg13[%c0_37, %c0_38], %53 {strides = array<i32>} : memref<8x1xf32, #tpu.memory_space<vmem>>, vector<8x1xf32>,
      %55 = vector.broadcast %53 : vector<8x1xf32> to vector<8x8xf32>
      %56 = arith.subf %48, %55 : vector<8x8xf32>
      %57 = math.exp %56 : vector<8x8xf32>
      %cst_39 = arith.constant dense<0.000000e+00> : vector<8xf32>
      %58 = vector.multi_reduction <add>, %57, %cst_39 [1] : vector<8x8xf32> to vector<8xf32>
      %59 = vector.shape_cast %58 : vector<8xf32> to vector<8x1xf32>
      %c0_40 = arith.constant 0 : index
      %c0_41 = arith.constant 0 : index
      %60 = vector.load %arg14[%c0_40, %c0_41] : memref<8x1xf32, #tpu.memory_space<vmem>>, vector<8x1xf32>
      tpu.vector_store %arg14[%c0_40, %c0_41], %59 {strides = array<i32>} : memref<8x1xf32, #tpu.memory_space<vmem>>, vector<8x1xf32>,
    } else {
    }
    %c0_8 = arith.constant 0 : index
    %c0_9 = arith.constant 0 : index
    %11 = vector.load %arg13[%c0_8, %c0_9] : memref<8x1xf32, #tpu.memory_space<vmem>>, vector<8x1xf32>
    %cst_10 = arith.constant dense<0xFF800000> : vector<8xf32>
    %12 = vector.multi_reduction <maximumf>, %6, %cst_10 [1] : vector<8x128xf32> to vector<8xf32>
    %13 = vector.shape_cast %12 : vector<8xf32> to vector<8x1xf32>
    %14 = arith.maximumf %11, %13 : vector<8x1xf32>
    %c0_11 = arith.constant 0 : index
    %c0_12 = arith.constant 0 : index
    %15 = vector.load %arg14[%c0_11, %c0_12] : memref<8x1xf32, #tpu.memory_space<vmem>>, vector<8x1xf32>
    %16 = arith.subf %11, %14 : vector<8x1xf32>
    %17 = math.exp %16 : vector<8x1xf32>
    %18 = arith.mulf %15, %17 : vector<8x1xf32>
    %19 = vector.broadcast %14 : vector<8x1xf32> to vector<8x128xf32>
    %20 = arith.subf %6, %19 : vector<8x128xf32>
    %21 = math.exp %20 : vector<8x128xf32>
    %cst_13 = arith.constant dense<0.000000e+00> : vector<8xf32>
    %22 = vector.multi_reduction <add>, %21, %cst_13 [1] : vector<8x128xf32> to vector<8xf32>
    %23 = vector.shape_cast %22 : vector<8xf32> to vector<8x1xf32>
    %24 = arith.addf %18, %23 : vector<8x1xf32>
    %c0_14 = arith.constant 0 : index
    %c0_15 = arith.constant 0 : index
    %25 = vector.load %arg14[%c0_14, %c0_15] : memref<8x1xf32, #tpu.memory_space<vmem>>, vector<8x1xf32>
    tpu.vector_store %arg14[%c0_14, %c0_15], %24 {strides = array<i32>} : memref<8x1xf32, #tpu.memory_space<vmem>>, vector<8x1xf32>,
    %c0_16 = arith.constant 0 : index
    %c0_17 = arith.constant 0 : index
    %26 = vector.load %arg13[%c0_16, %c0_17] : memref<8x1xf32, #tpu.memory_space<vmem>>, vector<8x1xf32>
    tpu.vector_store %arg13[%c0_16, %c0_17], %14 {strides = array<i32>} : memref<8x1xf32, #tpu.memory_space<vmem>>, vector<8x1xf32>,
    %c0_i32_18 = arith.constant 0 : i32
    %27 = arith.cmpi eq, %arg1, %c0_i32_18 : i32
    %28 = arith.extui %27 : i1 to i32
    %c0_i32_19 = arith.constant 0 : i32
    %29 = arith.cmpi ne, %28, %c0_i32_19 : i32
    scf.if %29 {
      %c0_20 = arith.constant 0 : index
      %c0_21 = arith.constant 0 : index
      %30 = vector.load %arg13[%c0_20, %c0_21] : memref<8x1xf32, #tpu.memory_space<vmem>>, vector<8x1xf32>
      %c0_22 = arith.constant 0 : index
      %c0_23 = arith.constant 0 : index
      %31 = vector.load %arg14[%c0_22, %c0_23] : memref<8x1xf32, #tpu.memory_space<vmem>>, vector<8x1xf32>
      %32 = math.log %31 : vector<8x1xf32>
      %33 = arith.addf %30, %32 : vector<8x1xf32>
      %c0_24 = arith.constant 0 : index
      %c0_25 = arith.constant 0 : index
      %34 = vector.load %arg11[%c0_24, %c0_25] : memref<8x1xf32, #tpu.memory_space<vmem>>, vector<8x1xf32>
      tpu.vector_store %arg11[%c0_24, %c0_25], %33 {strides = array<i32>} : memref<8x1xf32, #tpu.memory_space<vmem>>, vector<8x1xf32>,
      %c0_26 = arith.constant 0 : index
      %c0_27 = arith.constant 0 : index
      %35 = vector.load %arg12[%c0_26, %c0_27] : memref<8x8xf32, #tpu.memory_space<vmem>>, vector<8x8xf32>
      %36 = vector.broadcast %33 : vector<8x1xf32> to vector<8x8xf32>
      %37 = arith.subf %35, %36 : vector<8x8xf32>
      %c0_28 = arith.constant 0 : index
      %c0_29 = arith.constant 0 : index
      %38 = vector.load %arg10[%c0_28, %c0_29] : memref<8x8xf32, #tpu.memory_space<vmem>>, vector<8x8xf32>
      tpu.vector_store %arg10[%c0_28, %c0_29], %37 {strides = array<i32>} : memref<8x8xf32, #tpu.memory_space<vmem>>, vector<8x8xf32>,
    } else {
    }
    return
  }
  func.func @transform_0(%arg0: i32, %arg1: i32) -> (i32, i32) {
    %c0_i32 = arith.constant 0 : i32
    %c0_i32_0 = arith.constant 0 : i32
    return %arg0, %c0_i32 : i32, i32
  }
  func.func @transform_1(%arg0: i32, %arg1: i32) -> (i32, i32, i32) {
    %c0_i32 = arith.constant 0 : i32
    %c0_i32_0 = arith.constant 0 : i32
    %c0_i32_1 = arith.constant 0 : i32
    return %arg0, %c0_i32, %c0_i32_0 : i32, i32, i32
  }
  func.func @transform_2(%arg0: i32, %arg1: i32) -> (i32, i32) {
    %c0_i32 = arith.constant 0 : i32
    %c0_i32_0 = arith.constant 0 : i32
    return %arg0, %c0_i32 : i32, i32
  }
  func.func @transform_3(%arg0: i32, %arg1: i32) -> (i32, i32) {
    %c0_i32 = arith.constant 0 : i32
    %c0_i32_0 = arith.constant 0 : i32
    return %c0_i32, %arg1 : i32, i32
  }
  func.func @transform_4(%arg0: i32, %arg1: i32) -> (i32, i32) {
    %c0_i32 = arith.constant 0 : i32
    %c0_i32_0 = arith.constant 0 : i32
    return %c0_i32, %arg1 : i32, i32
  }
  func.func @transform_5(%arg0: i32, %arg1: i32) -> (i32, i32) {
    %c0_i32 = arith.constant 0 : i32
    %c0_i32_0 = arith.constant 0 : i32
    %c0_i32_1 = arith.constant 0 : i32
    return %c0_i32, %c0_i32_0 : i32, i32
  }
  func.func @transform_6(%arg0: i32, %arg1: i32) -> (i32, i32) {
    %c0_i32 = arith.constant 0 : i32
    %c0_i32_0 = arith.constant 0 : i32
    %c0_i32_1 = arith.constant 0 : i32
    return %c0_i32, %c0_i32_0 : i32, i32
  }
  func.func @transform_7(%arg0: i32, %arg1: i32) -> (i32, i32) {
    %c0_i32 = arith.constant 0 : i32
    return %arg0, %arg1 : i32, i32
  }
  func.func @transform_8(%arg0: i32, %arg1: i32) -> (i32, i32) {
    %c0_i32 = arith.constant 0 : i32
    %c0_i32_0 = arith.constant 0 : i32
    return %arg0, %c0_i32 : i32, i32
  }
  func.func @transform_9(%arg0: i32, %arg1: i32) -> (i32, i32) {
    %c0_i32 = arith.constant 0 : i32
    %c0_i32_0 = arith.constant 0 : i32
    return %arg0, %c0_i32 : i32, i32
  }
}

</mosaic_0001>

<bundles_post_ra>
// kernel: tpu_custom_call.1
= control target key start
LH: loop header
LB: loop body
LE: loop exit
PB: predicated region body
PF: predicated region fallthrough
CT: control target
= control target key end

     0   :  { %15 = vsyncpa [#allocation6], 0  ;;  %s965_s0 = inlined_call_operand.hbm [shape: f32[8,32], index: 0, kind: input, shape index: {}]   ;;  %s966_s1 = inlined_call_operand.hbm [shape: f32[8,8,32], index: 1, kind: input, shape index: {}]   ;;  %s967_s2 = inlined_call_operand.hbm [shape: s32[8,8], index: 2, kind: input, shape index: {}]   ;;  %s968_s3 = inlined_call_operand.hbm [shape: bf16[32,128], index: 3, kind: input, shape index: {}]   ;;  %s969_s4 = inlined_call_operand.vmem [shape: f32[1,128], index: 4, kind: input, shape index: {}]   ;;  %s970_s5 = inlined_call_operand.vmem [shape: bf16[32,32], index: 5, kind: input, shape index: {}]   ;;  %s971_s6 = inlined_call_operand.vmem [shape: f32[1,32], index: 6, kind: input, shape index: {}]   ;;  %s972_s7 = inlined_call_operand.hbm [shape: f32[8,128], index: 7, kind: output, shape index: {0}]   ;;  %s973_s8 = inlined_call_operand.hbm [shape: f32[8,8], index: 8, kind: output, shape index: {1}]   ;;  %s974_s9 = inlined_call_operand.vmem [shape: f32[8,1], index: 9, kind: output, shape index: {2}]  }
   0x1   :  { %16 = vsyncpa [#allocation9], 0 }
   0x2   :  { %17 = vsyncpa [#allocation12], 0 }
   0x3   :  { %18 = vsyncpa [#allocation7], 0 }
   0x4   :  { %19 = vsyncpa [#allocation15], 0  ;;  %s777_s30 = smov [#allocation8]   ;;  %s635_s13 = scalar_lea.hbm %s966_s1, 1024 }
   0x5   :  { %s35_s10 = sshll.u32 %s777_s30, 4  ;;  %p636_p0 = scmp.ne.s32.totalorder %s966_s1, %s635_s13  ;;  %s36_s10 = int_to_ptr.vmem [resolvable:$true] %s35_s10 }
   0x6   :  { %p639_p1 = scmp.lt.u32.totalorder %s635_s13, %s966_s1 }
   0x8   :  { %p641_p2 = pnand %p639_p1, %p636_p0 }
   0xa   :  { %644 = shalt.err (!%p641_p2)
}
   0xb   :  { %s645_s18 = scalar_lea.vmem %s36_s10, 1024  ;;  %p650_p4 = scmp.lt.s32.totalorder %s36_s10, %s36_s10 }
   0xc   :  { %p646_p3 = scmp.ne.s32.totalorder %s36_s10, %s645_s18  ;;  %p651_p5 = scmp.lt.s32.totalorder %s645_s18, %s645_s18 }
   0xe   :  { %p652_p6 = por %p651_p5, %p650_p4 }
  0x10   :  { %p653_p7 = pnand %p652_p6, %p646_p3 }
  0x12   :  { %656 = shalt.err (!%p653_p7)
}
  0x13   :  { %s778_s19 = smov 128   ;;  %s779_s20 = smov 8  }
  0x14   :  { %41 = dma.hbm_to_vmem [thread:$0]  %s966_s1, 1024, %s36_s10, [#allocation9], %s778_s19, %s778_s19, %s779_s20  }
  0x15   :  { %s780_s23 = smov [#allocation5]   ;;  %s781_s25 = smov [#allocation10]  }
  0x16   :  { %s26_s24 = sshll.u32 %s780_s23, 4  ;;  %s48_s26 = sshll.u32 %s781_s25, 4  ;;  %s27_s24 = int_to_ptr.vmem [resolvable:$true] %s26_s24  ;;  %s49_s26 = int_to_ptr.vmem [resolvable:$true] %s48_s26 }
  0x17   :  { %s657_s29 = scalar_lea.hbm %s965_s0, 128 }
  0x18   :  { %p658_p8 = scmp.ne.s32.totalorder %s965_s0, %s657_s29  ;;  %p661_p9 = scmp.lt.u32.totalorder %s657_s29, %s965_s0 }
  0x1a   :  { %p663_p10 = pnand %p661_p9, %p658_p8 }
  0x1c   :  { %666 = shalt.err (!%p663_p10)
}
  0x1d   :  { %s667_s1 = scalar_lea.vmem %s27_s24, 128  ;;  %p672_p12 = scmp.lt.s32.totalorder %s27_s24, %s27_s24 }
  0x1e   :  { %p668_p11 = scmp.ne.s32.totalorder %s27_s24, %s667_s1  ;;  %p673_p13 = scmp.lt.s32.totalorder %s667_s1, %s667_s1 }
  0x20   :  { %p674_p0 = por %p673_p13, %p672_p12 }
  0x22   :  { %p675_p1 = pnand %p674_p0, %p668_p11 }
  0x24   :  { %678 = shalt.err (!%p675_p1)
}
  0x25   :  { %29 = dma.hbm_to_vmem [thread:$0]  %s965_s0, 128, %s27_s24, [#allocation6]  }
  0x26   :  { %s679_s17 = scalar_lea.hbm %s967_s2, 128 }
  0x27   :  { %p680_p2 = scmp.ne.s32.totalorder %s967_s2, %s679_s17  ;;  %p683_p3 = scmp.lt.u32.totalorder %s679_s17, %s967_s2 }
  0x29   :  { %p685_p4 = pnand %p683_p3, %p680_p2 }
  0x2b   :  { %688 = shalt.err (!%p685_p4)
}
  0x2c   :  { %s689_s22 = scalar_lea.vmem %s49_s26, 128  ;;  %p694_p6 = scmp.lt.s32.totalorder %s49_s26, %s49_s26 }
  0x2d   :  { %p690_p5 = scmp.ne.s32.totalorder %s49_s26, %s689_s22  ;;  %p695_p7 = scmp.lt.s32.totalorder %s689_s22, %s689_s22 }
  0x2f   :  { %p696_p8 = por %p695_p7, %p694_p6 }
  0x31   :  { %p697_p9 = pnand %p696_p8, %p690_p5 }
  0x33   :  { %700 = shalt.err (!%p697_p9)
}
  0x34   :  { %51 = dma.hbm_to_vmem [thread:$0]  %s967_s2, 128, %s49_s26, [#allocation9]  }
  0x35   :  { %s782_s24 = smov [#allocation11]   ;;  %s701_s29 = scalar_lea.hbm %s968_s3, 256 }
  0x36   :  { %s57_s25 = sshll.u32 %s782_s24, 4  ;;  %p702_p10 = scmp.ne.s32.totalorder %s968_s3, %s701_s29  ;;  %s58_s25 = int_to_ptr.vmem [resolvable:$true] %s57_s25 }
  0x37   :  { %p705_p11 = scmp.lt.u32.totalorder %s701_s29, %s968_s3 }
  0x39   :  { %p707_p12 = pnand %p705_p11, %p702_p10 }
  0x3b   :  { %710 = shalt.err (!%p707_p12)
}
  0x3c   :  { %s711_s1 = scalar_lea.vmem %s58_s25, 256  ;;  %p716_p0 = scmp.lt.s32.totalorder %s58_s25, %s58_s25 }
  0x3d   :  { %p712_p13 = scmp.ne.s32.totalorder %s58_s25, %s711_s1  ;;  %p717_p1 = scmp.lt.s32.totalorder %s711_s1, %s711_s1 }
  0x3f   :  { %p718_p2 = por %p717_p1, %p716_p0 }
  0x41   :  { %p719_p3 = pnand %p718_p2, %p712_p13 }
  0x43   :  { %722 = shalt.err (!%p719_p3)
}
  0x44   :  { %s783_s2 = smov 64   ;;  %s784_s26 = smov 4  }
  0x45   :  { %63 = dma.hbm_to_vmem [thread:$0]  %s968_s3, 256, %s58_s25, [#allocation12], %s783_s2, %s783_s2, %s784_s26  }
  0x46   :  { %767 = dma.done.wait [#allocation6], 128  }
  0x47   :  { %768 = vsyncadd [#allocation6], 4294967168 }
  0x48   :  { %769 = dma.done.wait [#allocation9], 1152  }
  0x49   :  { %770 = vsyncadd [#allocation9], 4294966144 }
  0x4a   :  { %771 = dma.done.wait [#allocation12], 256  }
  0x4b   :  { %772 = vsyncadd [#allocation12], 4294967040  ;;  %v785_v0 = vmov 0.0   ;;  %vm786_vm0 = vmmov 0   ;;  %v606_v1 = vld [vmem:[%s970_s5] sm:$0xff]   ;;  %v607_v2 = vld [vmem:[%s970_s5 + $0x8] sm:$0xff]   ;;  %v282_v19 = vlaneseq }
  0x4c   :  { %570 = vmatprep.subr.bf16.mxu0 %v785_v0  ;;  %574 = vmatprep.mubr.msk.bf16.mxu0 %vm786_vm0, %v785_v0  ;;  %vm108_vm1 = vcmask 261120   ;;  %v157_v3 = vld [vmem:[#allocation8] sm:$0xff]  ;;  %v158_v4 = vld [vmem:[#allocation8 + $0x8] sm:$0xff]  ;;  %v159_v6 = vld [vmem:[#allocation8 + $0x10] sm:$0xff]  ;;  %v787_v23 = vmov 1966171168  }
  0x4d   :  { %578 = vmatprep.subr.bf16.mxu1 %v606_v1  ;;  %v165_v5 = vpack.c.bf16 %v158_v4, %v157_v3  ;;  %v160_v7 = vld [vmem:[#allocation8 + $0x18] sm:$0xff]  ;;  %v161_v8 = vld [vmem:[#allocation8 + $0x20] sm:$0xff]  ;;  %v162_v9 = vld [vmem:[#allocation8 + $0x28] sm:$0xff]  ;;  %v410_v20 = vand.u32 127, %v282_v19  ;;  %v283_v21 = vshrl.u32 %v282_v19, 7  ;;  %v280_v24 = vunpack.c.l.s4 %v787_v23  ;;  %s789_s21 = smov [#allocation13]  }
  0x4e   :  { %579 = vmatpush3.bf16.msra.mxu1 %v606_v1  ;;  %v608_v10 = vld [vmem:[#allocation11] sm:$0xff]   ;;  %v166_v11 = vpack.c.bf16 %v160_v7, %v159_v6  ;;  %v167_v12 = vpack.c.bf16 %v162_v9, %v161_v8  ;;  %v609_v13 = vld [vmem:[#allocation11 + $0x8] sm:$0xff]   ;;  %v83_v14 = vld [vmem:[#allocation5] sm:$0xff]  ;;  %vm443_vm2 = vcmask 1041409   ;;  %vm445_vm3 = vcmask 1042434   ;;  %s521_s22 = sshll.u32 %s789_s21, 4  ;;  %s522_s22 = int_to_ptr.vmem [resolvable:$true] %s521_s22 }
  0x4f   :  { %580 = vmatprep.subr.bf16.mxu1 %v607_v2  ;;  %582 = vmatprep.mubr.msk.bf16.mxu1 %vm108_vm1, %v165_v5  ;;  %v84_v15 = vpack.c.bf16 %v83_v14, %v83_v14  ;;  %v163_v16 = vld [vmem:[#allocation8 + $0x30] sm:$0xff]  ;;  %v164_v17 = vld [vmem:[#allocation8 + $0x38] sm:$0xff]  ;;  %v900_v22 = vsub.s32 %v410_v20, %v283_v21  ;;  %v281_v25 = vunpack.c.0.s8 %v280_v24  ;;  %v278_v38 = vcombine.high %v83_v14, %v83_v14  ;;  %s723_s0 = scalar_lea.vmem %s522_s22, 128  ;;  %p728_p5 = scmp.lt.s32.totalorder %s522_s22, %s522_s22 }
  0x50   :  { %571 = vmatpush3.bf16.msra.mxu0 %v608_v10  ;;  %v168_v18 = vpack.c.bf16 %v164_v17, %v163_v16  ;;  %v554_v28 = vld [vmem:[%s971_s6] ss:$0 sm:$0xff]  ;;  %v329_v42 = vsub.s32 0, %v283_v21  ;;  %vm447_vm4 = vcmask 1043459   ;;  %vm449_vm5 = vcmask 1044484   ;;  %p724_p4 = scmp.ne.s32.totalorder %s522_s22, %s723_s0  ;;  %p729_p6 = scmp.lt.s32.totalorder %s723_s0, %s723_s0 }
  0x51   :  { %572 = vmatprep.subr.bf16.mxu0 %v785_v0  ;;  %v284_v26 = vsub.s32 %v281_v25, %v283_v21  ;;  %vm451_vm6 = vcmask 1045509   ;;  %vm453_vm7 = vcmask 1046534   ;;  %vm455_vm8 = vcmask 1047559  }
  0x52   :  { %581 = vmatpush3.bf16.msra.mxu1 %v607_v2  ;;  %vm459_vm10 = vcmask 64512   ;;  %vm465_vm11 = vcmask 7168   ;;  %p730_p7 = por %p729_p6, %p728_p5 }
  0x53   :  { %v285_v27 = vrot.slane %v83_v14, %v284_v26  ;;  %v292_v43 = vrot.slane %v278_v38, %v284_v26 }
  0x54   :  { %573 = vmatpush3.bf16.msra.mxu0 %v609_v13  ;;  %p731_p8 = pnand %p730_p7, %p724_p4 }
  0x55   :  { %583 = vmatmul.mubr.msk.bf16.vlgmr.msra.gmra.mrb[0].mxu1 %vm108_vm1, %v166_v11  ;;  %v293_v30 = vcombine.high %v285_v27, %v285_v27  ;;  %v301_v35 = vrot.slane %v285_v27, %v284_v26  ;;  %v294_v54 = vcombine.high %v292_v43, %v292_v43  ;;  %v308_v59 = vrot.slane %v292_v43, %v284_v26  ;;  %v550_v27 = vld [vmem:[%s969_s4] ss:$0 sm:$0xff] }
  0x56   :  { %586 = vmatprep.mubr.msk.bf16.mxu1 %vm108_vm1, %v167_v12 }
  0x57   :  { %575 = vmatmul.mubr.msk.bf16.vlgmr.msra.gmra.mrb[0].mxu0 %vm108_vm1, %v84_v15  ;;  %v315_v40 = vrot.slane %v293_v30, %v284_v26  ;;  %v323_v41 = vcombine.high %v301_v35, %v301_v35  ;;  %v330_v53 = vrot.slane %v301_v35, %v329_v42  ;;  %v322_v0 = vrot.slane %v294_v54, %v284_v26 }
  0x58   :  { %v324_v6 = vcombine.high %v308_v59, %v308_v59  ;;  %v346_v7 = vrot.slane %v308_v59, %v329_v42  ;;  %v788_v59 = vmov 0  }
  0x59   :  { %v325_v45 = vcombine.high %v315_v40, %v315_v40  ;;  %v338_v50 = vrot.slane %v323_v41, %v329_v42  ;;  %v334_v58 = vrot.slane %v315_v40, %v329_v42  ;;  %v326_v8 = vcombine.high %v322_v0, %v322_v0  ;;  %604 = vset.pattern.permute.xlu0 %v788_v59 }
  0x5a   :  { %v350_v12 = vrot.slane %v322_v0, %v329_v42  ;;  %v354_v13 = vrot.slane %v324_v6, %v329_v42  ;;  %605 = vset.pattern.permute.xlu1 %v788_v59 }
  0x5b   :  { %v342_v56 = vrot.slane %v325_v45, %v329_v42  ;;  %v358_v17 = vrot.slane %v326_v8, %v329_v42 }
  0x5d   :  { %587 = vmatmul.mubr.msk.bf16.gmra.mrb[4].mxu1 %vm108_vm1, %v168_v18 }
 0x128   :  { %v584_v29 = vpop.f32.mrb[0].mxu1 }
 0x129   :  { %v247_v31 = vadd.f32 %v584_v29, %v554_v28  ;;  %v238_v32 = vpop.f32.mrb[1].mxu1 }
 0x12a   :  { %v239_v33 = vadd.f32 %v554_v28, %v238_v32  ;;  %v585_v34 = vpop.f32.mrb[2].mxu1 }
 0x12b   :  { %611 = vtanh.f32 %v247_v31  ;;  %v250_v36 = vadd.f32 %v585_v34, %v554_v28  ;;  %v241_v37 = vpop.f32.mrb[3].mxu1 }
 0x12c   :  { %613 = vtanh.f32 %v239_v33  ;;  %v242_v39 = vadd.f32 %v554_v28, %v241_v37 }
 0x12d   :  { %615 = vtanh.f32 %v250_v36 }
 0x12e   :  { %617 = vtanh.f32 %v242_v39 }
 0x130   :  { %v588_v44 = vpop.f32.mrb[4].mxu1 }
 0x131   :  { %v263_v46 = vadd.f32 %v588_v44, %v554_v28  ;;  %v254_v47 = vpop.f32.mrb[5].mxu1 }
 0x132   :  { %v255_v48 = vadd.f32 %v554_v28, %v254_v47  ;;  %v589_v49 = vpop.f32.mrb[6].mxu1 }
 0x133   :  { %619 = vtanh.f32 %v263_v46  ;;  %v266_v51 = vadd.f32 %v589_v49, %v554_v28  ;;  %v257_v52 = vpop.f32.mrb[7].mxu1 }
 0x134   :  { %621 = vtanh.f32 %v255_v48  ;;  %v258_v55 = vadd.f32 %v554_v28, %v257_v52  ;;  %v146_v28 = vpop.f32.mrb[0].mxu0 }
 0x135   :  { %v612_v57 = vpop.eup %611  ;;  %623 = vtanh.f32 %v266_v51  ;;  %v916_v29 = vadd.f32 %v550_v27, %v146_v28  ;;  %v576_v30 = vpop.f32.mrb[1].mxu0 }
 0x136   :  { %v614_v60 = vpop.eup %613  ;;  %625 = vtanh.f32 %v258_v55  ;;  %v369_v61 = vmul.f32 %v612_v57, %v338_v50  ;;  %v149_v31 = vpop.f32.mrb[2].mxu0  ;;  %v399_v50 = vld [vmem:[#allocation10] sm:$0xff] }
 0x137   :  { %v616_v62 = vpop.eup %615  ;;  %v367_v63 = vmul.f32 %v614_v60, %v330_v53  ;;  %152 = vst [vmem:[#allocation13] sm:$0xff] %v916_v29  ;;  %v577_v32 = vpop.f32.mrb[3].mxu0  ;;  %vm400_vm9 = vcmp.ne.s32.totalorder %v399_v50, 0 }
 0x138   :  { %v618_v1 = vpop.eup %617  ;;  %v381_v2 = vsel %vm108_vm1, %v369_v61, 0.0  ;;  %v370_v3 = vmul.f32 %v616_v62, %v342_v56 }
 0x139   :  { %382 = vadd.xlane.f32.xlu1 %v381_v2  ;;  %v375_v4 = vsel %vm108_vm1, %v367_v63, 0.0  ;;  %v368_v5 = vmul.f32 %v618_v1, %v334_v58 }
 0x13a   :  { %376 = vadd.xlane.f32.xlu0 %v375_v4  ;;  %v384_v9 = vsel %vm108_vm1, %v370_v3, 0.0 }
 0x13b   :  { %v378_v11 = vsel %vm108_vm1, %v368_v5, 0.0 }
 0x13d   :  { %v620_v10 = vpop.eup %619  ;;  %385 = vadd.xlane.f32.xlu1 %v384_v9 }
 0x13e   :  { %v622_v14 = vpop.eup %621  ;;  %379 = vadd.xlane.f32.xlu0 %v378_v11  ;;  %v373_v21 = vmul.f32 %v620_v10, %v354_v13 }
 0x13f   :  { %v624_v15 = vpop.eup %623  ;;  %v371_v16 = vmul.f32 %v622_v14, %v346_v7 }
 0x140   :  { %v626_v18 = vpop.eup %625  ;;  %v374_v24 = vmul.f32 %v624_v15, %v358_v17  ;;  %v393_v25 = vsel %vm108_vm1, %v373_v21, 0.0 }
 0x141   :  { %v387_v19 = vsel %vm108_vm1, %v371_v16, 0.0  ;;  %v372_v20 = vmul.f32 %v626_v18, %v350_v12 }
 0x142   :  { %388 = vadd.xlane.f32.xlu0 %v387_v19  ;;  %v396_v26 = vsel %vm108_vm1, %v374_v24, 0.0 }
 0x143   :  { %v390_v23 = vsel %vm108_vm1, %v372_v20, 0.0 }
 0x144   :  { %391 = vadd.xlane.f32.xlu1 %v390_v23 }
 0x146   :  { %394 = vadd.xlane.f32.xlu0 %v393_v25 }
 0x148   :  { %397 = vadd.xlane.f32.xlu1 %v396_v26 }
 0x14c   :  { %475 = vmax.xlane.f32.xlu1 %v916_v29 }
 0x1c6   :  { %v383_v33 = vpop.xlane.xlu1 %382 }
 0x1c7   :  { %v377_v34 = vpop.xlane.xlu0 %376  ;;  %v422_v39 = vrot.slane %v383_v33, %v900_v22 }
 0x1c8   :  { %v414_v37 = vrot.slane %v377_v34, %v900_v22 }
 0x1ca   :  { %v386_v35 = vpop.xlane.xlu1 %385 }
 0x1cb   :  { %v380_v36 = vpop.xlane.xlu0 %379  ;;  %v426_v40 = vrot.slane %v386_v35, %v900_v22 }
 0x1cc   :  { %v418_v38 = vrot.slane %v380_v36, %v900_v22 }
 0x1ce   :  { %v444_v41 = vsel %vm443_vm2, %v418_v38, %v414_v37 }
 0x1cf   :  { %v446_v42 = vsel %vm445_vm3, %v422_v39, %v444_v41  ;;  %v389_v43 = vpop.xlane.xlu0 %388 }
 0x1d0   :  { %v448_v44 = vsel %vm447_vm4, %v426_v40, %v446_v42  ;;  %v430_v45 = vrot.slane %v389_v43, %v900_v22 }
 0x1d1   :  { %v392_v46 = vpop.xlane.xlu1 %391 }
 0x1d2   :  { %v450_v47 = vsel %vm449_vm5, %v430_v45, %v448_v44  ;;  %v434_v48 = vrot.slane %v392_v46, %v900_v22 }
 0x1d3   :  { %v395_v49 = vpop.xlane.xlu0 %394 }
 0x1d4   :  { %v452_v51 = vsel %vm451_vm6, %v434_v48, %v450_v47  ;;  %v438_v52 = vrot.slane %v395_v49, %v900_v22 }
 0x1d5   :  { %v398_v53 = vpop.xlane.xlu1 %397 }
 0x1d6   :  { %v454_v54 = vsel %vm453_vm7, %v438_v52, %v452_v51  ;;  %v442_v55 = vrot.slane %v398_v53, %v900_v22 }
 0x1d8   :  { %v456_v56 = vsel %vm455_vm8, %v442_v55, %v454_v54 }
 0x1d9   :  { %v458_v57 = vsel %vm400_vm9, -inf, %v456_v56  ;;  %v476_v22 = vpop.xlane.xlu1 %475 }
 0x1da   :  { %v461_v58 = vsel %vm459_vm10, %v458_v57, -inf  ;;  %460 = vst.msk [vmem:[#allocation2] sm:$0xff] %vm459_vm10, %v458_v57 }
 0x1db   :  { %462 = vmax.xlane.f32.xlu0 %v461_v58 }
 0x268   :  { %v463_v60 = vpop.xlane.xlu0 %462 }
 0x269   :  { %v464_v61 = vmax.f32 %v463_v60, -1e+30 }
 0x26b   :  { %466 = vst.msk [vmem:[#allocation3] sm:$0xff] %vm465_vm11, %v464_v61  ;;  %v467_v62 = vsub.f32 %v458_v57, %v464_v61 }
 0x26d   :  { %v468_v63 = vmul.f32 1.442695, %v467_v62 }
 0x26f   :  { %627 = vpow2.f32 %v468_v63 }
 0x272   :  { %v474_v0 = vld [vmem:[#allocation3] sm:$0xff] }
 0x273   :  { %v477_v1 = vmax.f32 %v474_v0, %v476_v22 }
 0x275   :  { %v479_v2 = vsub.f32 %v474_v0, %v477_v1  ;;  %496 = vst.msk [vmem:[#allocation3] sm:$0xff] %vm465_vm11, %v477_v1  ;;  %485 = vperm.xlu0 %604, %v477_v1  }
 0x277   :  { %v480_v10 = vmul.f32 1.442695, %v479_v2 }
 0x279   :  { %v628_v3 = vpop.eup %627 }
 0x27a   :  { %v470_v4 = vsel %vm459_vm10, %v628_v3, 0.0 }
 0x27b   :  { %471 = vadd.xlane.f32.xlu1 %v470_v4 }
 0x27c   :  { %v500_v19 = vld [vmem:[#allocation3] sm:$0xff] }
 0x2f4   :  { %v486_v5 = vpop.permute.xlu0 %485 }
 0x2f5   :  { %v488_v6 = vsub.f32 %v916_v29, %v486_v5 }
 0x2f7   :  { %v489_v7 = vmul.f32 1.442695, %v488_v6 }
 0x2f9   :  { %629 = vpow2.f32 %v489_v7 }
 0x2fa   :  { %631 = vpow2.f32 %v480_v10 }
 0x303   :  { %v630_v8 = vpop.eup %629 }
 0x304   :  { %491 = vadd.xlane.f32.xlu1 %v630_v8  ;;  %v632_v12 = vpop.eup %631 }
 0x308   :  { %v472_v9 = vpop.xlane.xlu1 %471 }
 0x309   :  { %473 = vst.msk [vmem:[#allocation4] sm:$0xff] %vm465_vm11, %v472_v9 }
 0x310   :  { %v478_v11 = vld [vmem:[#allocation4] sm:$0xff] }
 0x311   :  { %v482_v13 = vmul.f32 %v632_v12, %v478_v11 }
 0x391   :  { %v492_v14 = vpop.xlane.xlu1 %491 }
 0x392   :  { %v493_v15 = vadd.f32 %v492_v14, %v482_v13 }
 0x394   :  { %495 = vst.msk [vmem:[#allocation4] sm:$0xff] %vm465_vm11, %v493_v15 }
 0x39b   :  { %v501_v16 = vld [vmem:[#allocation4] sm:$0xff] }
 0x39c   :  { %633 = vlog2.f32 %v501_v16 }
 0x3a6   :  { %v634_v17 = vpop.eup %633 }
 0x3a7   :  { %v503_v18 = vmul.f32 0.6931472, %v634_v17 }
 0x3a9   :  { %v504_v20 = vadd.f32 %v503_v18, %v500_v19 }
 0x3ab   :  { %509 = vperm.xlu1 %605, %v504_v20   ;;  %505 = vst.msk [vmem:[%s974_s9] sm:$0xff] %vm465_vm11, %v504_v20 }
 0x3ac   :  { %734 = shalt.err (!%p731_p8)
}
 0x3ad   :  { %s735_s25 = scalar_lea.hbm %s972_s7, 128 }
 0x3ae   :  { %p736_p9 = scmp.ne.s32.totalorder %s972_s7, %s735_s25  ;;  %p739_p10 = scmp.lt.u32.totalorder %s735_s25, %s972_s7 }
 0x3b0   :  { %p741_p11 = pnand %p739_p10, %p736_p9 }
 0x3b2   :  { %744 = shalt.err (!%p741_p11)
}
 0x3b3   :  { %524 = dma.vmem_to_hbm [thread:$0]  %s522_s22, 128, %s972_s7, [#allocation7]   ;;  %v506_v21 = vld [vmem:[#allocation2] sm:$0xff] }
 0x3b4   :  { %s790_s12 = smov [#allocation14]  }
 0x3b5   :  { %s531_s13 = sshll.u32 %s790_s12, 4  ;;  %s532_s13 = int_to_ptr.vmem [resolvable:$true] %s531_s13 }
 0x3b6   :  { %s745_s1 = scalar_lea.vmem %s532_s13, 128  ;;  %p750_p13 = scmp.lt.s32.totalorder %s532_s13, %s532_s13 }
 0x3b7   :  { %p746_p12 = scmp.ne.s32.totalorder %s532_s13, %s745_s1  ;;  %p751_p0 = scmp.lt.s32.totalorder %s745_s1, %s745_s1 }
 0x3b9   :  { %p752_p1 = por %p751_p0, %p750_p13 }
 0x3bb   :  { %p753_p2 = pnand %p752_p1, %p746_p12 }
 0x42a   :  { %v510_v23 = vpop.permute.xlu1 %509 }
 0x42b   :  { %v512_v24 = vsub.f32 %v506_v21, %v510_v23 }
 0x42d   :  { %514 = vst.msk [vmem:[#allocation14] sm:$0xff] %vm459_vm10, %v512_v24 }
 0x42e   :  { %756 = shalt.err (!%p753_p2)
}
 0x42f   :  { %s757_s10 = scalar_lea.hbm %s973_s8, 128 }
 0x430   :  { %p758_p3 = scmp.ne.s32.totalorder %s973_s8, %s757_s10  ;;  %p761_p4 = scmp.lt.u32.totalorder %s757_s10, %s973_s8 }
 0x432   :  { %p763_p5 = pnand %p761_p4, %p758_p3 }
 0x434   :  { %766 = shalt.err (!%p763_p5)
}
 0x435   :  { %534 = dma.vmem_to_hbm [thread:$0]  %s532_s13, 128, %s973_s8, [#allocation15]  }
 0x436   :  { %773 = dma.done.wait [#allocation7], 128  }
 0x437   :  { %774 = vsyncadd [#allocation7], 4294967168 }
 0x438   :  { %775 = dma.done.wait [#allocation15], 128  }
 0x439   :  { %776 = vsyncadd [#allocation15], 4294967168 }
 0x43a   :  { %545 = vsyncpa [#allocation6], 1 }
 0x43b   :  { %546 = vsyncpa [#allocation9], 1 }
 0x43c   :  { %547 = vsyncpa [#allocation12], 1 }
 0x43d   :  { %548 = vsyncpa [#allocation7], 1 }
 0x43e   :  { %549 = vsyncpa [#allocation15], 1 }

</bundles_post_ra>
